<compile_context>
chip_gen: v7x
topology: tpu7x:2x2x1
jax: 0.10.0
libtpu: 0.0.40
codegen_flags: <defaults>
</compile_context>

<pallas_src>
import jax
import jax.numpy as jnp
from jax.experimental import pallas as pl
from jax.experimental.pallas import tpu as pltpu


# ----------------------------------------------------------------------------
# Interpolation weights (PyTorch align_corners=False semantics)
# ----------------------------------------------------------------------------
def _src_index_weights(in_size: int, out_size: int):
    """Half-pixel-center source indices / weights, clamped like PyTorch."""
    dst = jnp.arange(out_size, dtype=jnp.float32)
    src = (dst + 0.5) * (float(in_size) / float(out_size)) - 0.5
    src = jnp.maximum(src, 0.0)
    i0 = jnp.minimum(jnp.floor(src).astype(jnp.int32), in_size - 1)
    i1 = jnp.minimum(i0 + 1, in_size - 1)
    w1 = src - i0.astype(jnp.float32)
    w0 = 1.0 - w1
    return i0, i1, w0, w1


def _interp_matrix(in_size: int, out_size: int) -> jax.Array:
    """Row-stochastic (out_size, in_size) bilinear interpolation matrix."""
    i0, i1, w0, w1 = _src_index_weights(in_size, out_size)
    rows = jnp.arange(out_size)
    m = jnp.zeros((out_size, in_size), jnp.float32)
    m = m.at[rows, i0].add(w0)
    m = m.at[rows, i1].add(w1)
    return m


# ----------------------------------------------------------------------------
# Pallas kernel
# ----------------------------------------------------------------------------
def _bilinear_kernel(x_ref, wh_ref, wbd_ref, o_ref):
    # x_ref:   (1, H, TN*W)        packed input slab (bf16)
    # wh_ref:  (Ho, H)             row-interpolation matrix (bf16)
    # wbd_ref: (TN*W, TN*Wo)       block-diagonal column-interp matrix (bf16)
    # o_ref:   (1, Ho, TN*Wo)      packed output slab (orig dtype)
    x = x_ref[0]                                              # (H, TN*W)
    t = jnp.dot(wh_ref[...], x,
                preferred_element_type=jnp.float32)           # (Ho, TN*W) f32
    t = t.astype(jnp.bfloat16)
    out = jnp.dot(t, wbd_ref[...],
                  preferred_element_type=jnp.float32)         # (Ho, TN*Wo) f32
    o_ref[0] = out.astype(o_ref.dtype)


def _choose_tn(n_planes: int, wo: int) -> int:
    """Planes packed per grid step: make TN*Wo a multiple of 128 (lane-dense
    stores) while keeping >= 2 grid steps for megacore sharding."""
    if wo >= 128 or (128 % wo) != 0:
        return 1
    tn = max(1, min(128 // wo, n_planes))
    while tn > 1 and (n_planes + tn - 1) // tn < 2:
        tn //= 2
    return max(tn, 1)


def bilinear_decoder(x: jax.Array, scale_factor: int) -> jax.Array:
    """Equivalent of BilinearDecoder(scale_factor)(x) for NCHW input."""
    B, C, H, W = x.shape
    s = int(scale_factor)
    Ho, Wo = H * s, W * s
    N = B * C

    tn = _choose_tn(N, Wo)
    G = (N + tn - 1) // tn
    Np = G * tn

    # ---- pack planes along the lane axis: (N,H,W) -> (G, H, TN*W) ----------
    xf = x.reshape(N, H, W)
    if Np != N:
        xf = jnp.concatenate(
            [xf, jnp.zeros((Np - N, H, W), xf.dtype)], axis=0)
    xp = (xf.reshape(G, tn, H, W)
             .transpose(0, 2, 1, 3)
             .reshape(G, H, tn * W)
             .astype(jnp.bfloat16))

    # ---- interpolation matrices (bf16 for MXU fast path) -------------------
    wh = _interp_matrix(H, Ho).astype(jnp.bfloat16)             # (Ho, H)
    wwt = _interp_matrix(W, Wo).T                               # (W, Wo) f32
    # block-diagonal so the W-pass over TN packed planes is one big matmul
    wbd = jnp.kron(jnp.eye(tn, dtype=jnp.float32), wwt).astype(jnp.bfloat16)

    # ---- VMEM budget (explicit, with headroom; capped for v7x's 64 MiB) ----
    out_itemsize = jnp.dtype(x.dtype).itemsize
    x_blk = H * tn * W * 2
    o_blk = Ho * tn * Wo * out_itemsize
    w_bytes = Ho * H * 2 + (tn * W) * (tn * Wo) * 2
    interm = Ho * tn * W * (4 + 2)
    est = 2 * (x_blk + o_blk) + 2 * w_bytes + interm
    vmem_limit = int(min(max(4 * est, 32 * 1024 * 1024), 64 * 1024 * 1024))

    out = pl.pallas_call(
        _bilinear_kernel,
        out_shape=jax.ShapeDtypeStruct((G, Ho, tn * Wo), x.dtype),
        grid=(G,),
        in_specs=[
            pl.BlockSpec((1, H, tn * W), lambda g: (g, 0, 0)),
            pl.BlockSpec((Ho, H), lambda g: (0, 0)),
            pl.BlockSpec((tn * W, tn * Wo), lambda g: (0, 0)),
        ],
        out_specs=pl.BlockSpec((1, Ho, tn * Wo), lambda g: (g, 0, 0)),
        compiler_params=pltpu.CompilerParams(
            dimension_semantics=("parallel",),
            vmem_limit_bytes=vmem_limit),
    )(xp, wh, wbd)

    # ---- unpack: (G, Ho, TN*Wo) -> (B, C, Ho, Wo) ---------------------------
    out = (out.reshape(G, Ho, tn, Wo)
              .transpose(0, 2, 1, 3)
              .reshape(Np, Ho, Wo)[:N]
              .reshape(B, C, Ho, Wo))
    return out


# ----------------------------------------------------------------------------
# Pure-JAX f32 reference (PyTorch bilinear, align_corners=False semantics)
# ----------------------------------------------------------------------------
def _reference(x: jax.Array, scale_factor: int) -> jax.Array:
    B, C, H, W = x.shape
    s = int(scale_factor)
    Ho, Wo = H * s, W * s
    i0, i1, u0, u1 = _src_index_weights(H, Ho)
    j0, j1, v0, v1 = _src_index_weights(W, Wo)
    xf = x.astype(jnp.float32)
    t = (xf[:, :, i0, :] * u0[None, None, :, None]
         + xf[:, :, i1, :] * u1[None, None, :, None])          # (B,C,Ho,W)
    o = t[:, :, :, j0] * v0 + t[:, :, :, j1] * v1               # (B,C,Ho,Wo)
    return o.astype(x.dtype)


if __name__ == "__main__":
    key = jax.random.PRNGKey(0)
    B, C, H, W = 2, 4, 16, 16
    scale_factor = 2

    x = jax.random.normal(key, (B, C, H, W), dtype=jnp.float32)

    y = bilinear_decoder(x, scale_factor)
    y = jax.block_until_ready(y)

    assert y.shape == (B, C, H * scale_factor, W * scale_factor), y.shape

    y_ref = _reference(x, scale_factor)
    max_err = float(jnp.max(jnp.abs(y.astype(jnp.float32)
                                    - y_ref.astype(jnp.float32))))
    # inputs / intermediate are bf16 (per perf review); weights (0.25/0.75 for
    # scale=2) are exact in bf16, so only input/intermediate rounding remains.
    assert max_err < 3e-2, max_err

    print("KERNEL_OK")
</pallas_src>

<mosaic_0001>
module attributes {stable_mosaic.version = 11 : i64} {
  func.func @_bilinear_kernel(%arg0: i32, %arg1: memref<1x16x64xbf16, #tpu.memory_space<vmem>>, %arg2: memref<32x16xbf16, #tpu.memory_space<vmem>>, %arg3: memref<64x128xbf16, #tpu.memory_space<vmem>>, %arg4: memref<1x32x128xf32, #tpu.memory_space<vmem>>) attributes {dimension_semantics = [#tpu.dimension_semantics<parallel>], iteration_bounds = array<i64: 2>, scalar_prefetch = 0 : i64, scratch_operands = 0 : i64, tpu.core_type = #tpu.core_type<tc>, window_params = [{transform_indices = @transform_0, window_bounds = array<i64: 1, 16, 64>}, {pipeline_mode = #tpu.pipeline_mode<synchronous>, transform_indices = @transform_1, window_bounds = array<i64: 32, 16>}, {pipeline_mode = #tpu.pipeline_mode<synchronous>, transform_indices = @transform_2, window_bounds = array<i64: 64, 128>}, {transform_indices = @transform_3, window_bounds = array<i64: 1, 32, 128>}]} {
    %c0 = arith.constant 0 : index
    %c0_0 = arith.constant 0 : index
    %c0_1 = arith.constant 0 : index
    %0 = vector.load %arg1[%c0, %c0_0, %c0_1] : memref<1x16x64xbf16, #tpu.memory_space<vmem>>, vector<1x16x64xbf16>
    %1 = vector.shape_cast %0 : vector<1x16x64xbf16> to vector<16x64xbf16>
    %c0_2 = arith.constant 0 : index
    %c0_3 = arith.constant 0 : index
    %2 = vector.load %arg2[%c0_2, %c0_3] : memref<32x16xbf16, #tpu.memory_space<vmem>>, vector<32x16xbf16>
    %cst = arith.constant dense<0.000000e+00> : vector<32x64xf32>
    %3 = tpu.matmul %2, %1, %cst {dimension_numbers = #tpu.dot_dimension_numbers<[1], [0], [0], [1], [0, 0, 1, 1], [], []>} : vector<32x16xbf16>, vector<16x64xbf16>, vector<32x64xf32> -> vector<32x64xf32>
    %4 = arith.truncf %3 : vector<32x64xf32> to vector<32x64xbf16>
    %c0_4 = arith.constant 0 : index
    %c0_5 = arith.constant 0 : index
    %5 = vector.load %arg3[%c0_4, %c0_5] : memref<64x128xbf16, #tpu.memory_space<vmem>>, vector<64x128xbf16>
    %cst_6 = arith.constant dense<0.000000e+00> : vector<32x128xf32>
    %6 = tpu.matmul %4, %5, %cst_6 {dimension_numbers = #tpu.dot_dimension_numbers<[1], [0], [0], [1], [0, 0, 1, 1], [], []>} : vector<32x64xbf16>, vector<64x128xbf16>, vector<32x128xf32> -> vector<32x128xf32>
    %c0_7 = arith.constant 0 : index
    %c0_8 = arith.constant 0 : index
    %c0_9 = arith.constant 0 : index
    %7 = vector.load %arg4[%c0_7, %c0_8, %c0_9] : memref<1x32x128xf32, #tpu.memory_space<vmem>>, vector<1x32x128xf32>
    %8 = vector.shape_cast %7 : vector<1x32x128xf32> to vector<32x128xf32>
    %9 = vector.shape_cast %6 : vector<32x128xf32> to vector<1x32x128xf32>
    tpu.vector_store %arg4[%c0_7, %c0_8, %c0_9], %9 {strides = array<i32>} : memref<1x32x128xf32, #tpu.memory_space<vmem>>, vector<1x32x128xf32>,
    return
  }
  func.func @transform_0(%arg0: i32) -> (i32, i32, i32) {
    %c0_i32 = arith.constant 0 : i32
    %c0_i32_0 = arith.constant 0 : i32
    %c0_i32_1 = arith.constant 0 : i32
    return %arg0, %c0_i32, %c0_i32_0 : i32, i32, i32
  }
  func.func @transform_1(%arg0: i32) -> (i32, i32) {
    %c0_i32 = arith.constant 0 : i32
    %c0_i32_0 = arith.constant 0 : i32
    %c0_i32_1 = arith.constant 0 : i32
    return %c0_i32, %c0_i32_0 : i32, i32
  }
  func.func @transform_2(%arg0: i32) -> (i32, i32) {
    %c0_i32 = arith.constant 0 : i32
    %c0_i32_0 = arith.constant 0 : i32
    %c0_i32_1 = arith.constant 0 : i32
    return %c0_i32, %c0_i32_0 : i32, i32
  }
  func.func @transform_3(%arg0: i32) -> (i32, i32, i32) {
    %c0_i32 = arith.constant 0 : i32
    %c0_i32_0 = arith.constant 0 : i32
    %c0_i32_1 = arith.constant 0 : i32
    return %arg0, %c0_i32, %c0_i32_0 : i32, i32, i32
  }
}

</mosaic_0001>

<bundles_post_ra>
// kernel: tpu_custom_call.1
= control target key start
LH: loop header
LB: loop body
LE: loop exit
PB: predicated region body
PF: predicated region fallthrough
CT: control target
= control target key end

     0   :  { %8 = vsyncpa [#allocation3], 0  ;;  %s826_s0 = inlined_call_operand.vmem [shape: bf16[2,16,64], index: 0, kind: input, shape index: {}]   ;;  %s827_s1 = inlined_call_operand.vmem [shape: bf16[32,16], index: 1, kind: input, shape index: {}]   ;;  %s828_s2 = inlined_call_operand.hbm [shape: bf16[64,128], index: 2, kind: input, shape index: {}]   ;;  %s829_s3 = inlined_call_operand.hbm [shape: f32[2,32,128], index: 3, kind: output, shape index: {}]  }
   0x1   :  { %9 = vsyncpa [#allocation4], 0 }
   0x2   :  { %11 = vsyncpa [#allocation4 + $0x1], 0  ;;  %s682_s12 = smov 0   ;;  %s684_s13 = smov 0  }
   0x3   :  { %s686_s14 = smov 0   ;;  %s688_s15 = smov 0  }
   0x4 LB: > { %s703_s16 = sadd.s32 4294967295, %s654_s15   ;;  %s445_s17 = sadd.s32 4294967294, %s654_s15   ;;  %s654_s15 = sphi %s688_s15, %s845_s15   ;;  %s650_s14 = sphi %s686_s14, %s844_s14   ;;  %s646_s13 = sphi %s684_s13, %s843_s13   ;;  %s642_s12 = sphi %s682_s12, %s842_s12  }
   0x5   : > { %s707_s18 = sadd.s32 1, %s654_s15   ;;  %s92_s19 = sadd.s32 1, %s650_s14 }
   0x6   : > { %s89_s20 = ssub.s32 %s654_s15, %s707_s18  ;;  %p102_p0 = scmp.ne.s32.totalorder %s650_s14, %s646_s13 }
   0x7   : > { %p90_p1 = scmp.eq.s32.totalorder %s89_s20, 0  ;;  %p103_p2 = scmp.eq.s32.totalorder %s703_s16, 1 }
   0x8   : > { %p108_p3 = scmp.ne.s32.totalorder %s646_s13, %s642_s12  ;;  %p109_p4 = scmp.eq.s32.totalorder %s445_s17, 1 }
   0x9   : > { %s718_s21 = scalar_select %p90_p1, %s650_s14, %s92_s19  }
   0xa   : > { %p720_p5 = por %p103_p2, %p102_p0  ;;  %p724_p6 = por %p109_p4, %p108_p3 }
   0xb   : > { %p446_p7 = scmp.ge.s32.totalorder %s654_s15, 1  ;;  %p116_p8 = scmp.lt.s32.totalorder %s654_s15, 3 }
   0xc   : > { %s833_s22 = scalar_select %p720_p5, 1, 0 }
   0xd   : > { %s834_s23 = scalar_select %p724_p6, 1, 0 }
   0xe   : > { %p830_p9 = scmp.eq.s32.totalorder %s703_s16, 0  ;;  %p731_p10 = pnand %p446_p7, %p116_p8 }
   0xf   : > { %s656_s25 = smov [#allocation2]   ;;  %s560_s30 = scalar_lea.hbm %s828_s2, 512 }
  0x10   : > { %s835_s24 = scalar_select %p731_p10, 1, 0 }
  0x11   : > { %s131_s26 = sshll.u32 %s656_s25, 4  ;;  %p505_p11 = pneg %p731_p10  ;;  %s132_s26 = int_to_ptr.vmem [resolvable:$true] %s131_s26 }
  0x12   : > { %p561_p13 = scmp.ne.s32.totalorder %s828_s2, %s560_s30  ;;  %p567_p3 = scmp.lt.u32.totalorder %s560_s30, %s828_s2 }
  0x13   : > { %p739_p12 = pnand %p830_p9, %p505_p11 }
  0x15   : > { %p562_p0 = pneg %p739_p12 }
  0x17   : > { %p563_p1 = pnand %p562_p0, %p561_p13 }
  0x19   : > { %p564_p2 = pneg %p563_p1 }
  0x1b   : > { %p569_p4 = pnand %p567_p3, %p564_p2 }
  0x1d   : > { %572 = shalt.err (!%p569_p4)
}
  0x1e   : > { %s573_s8 = scalar_lea.vmem %s132_s26, 512  ;;  %p581_p9 = scmp.lt.s32.totalorder %s132_s26, %s132_s26 }
  0x1f   : > { %p574_p7 = scmp.ne.s32.totalorder %s132_s26, %s573_s8  ;;  %p582_p6 = scmp.lt.s32.totalorder %s573_s8, %s573_s8 }
  0x21   : > { %p576_p8 = pnand %p574_p7, %p562_p0  ;;  %p583_p5 = por %p582_p6, %p581_p9 }
  0x23   : > { %p577_p11 = pneg %p576_p8 }
  0x25   : > { %p584_p10 = pnand %p583_p5, %p577_p11 }
  0x27   : > { %587 = shalt.err (!%p584_p10)
}
  0x28   : > { %s657_s9 = smov 64   ;;  %s658_s10 = smov 4  }
  0x29   : > { %508 = dma.hbm_to_vmem [thread:$0]  (!%p739_p12), %s828_s2, 512, %s132_s26, [#allocation3], %s657_s9, %s657_s9, %s658_s10  }
  0x2a   : > { %p837_p13 = scmp.ne.s32.totalorder %s835_s24, 0 }
  0x2b   : > { %p838_p1 = scmp.eq.s32.totalorder (!%p837_p13), %s703_s16, 0 }
  0x2c   : > { %155 = sbr.rel (%p837_p13) target bundleno = 511 (0x1ff), region = 32 }
  0x33   : > { %633 = dma.done.wait (%p838_p1), [#allocation3], 512   ;;  %p839_p0 = pmov %p838_p1 }
  0x34   : > { %p179_p5 = scmp.lt.s32.totalorder %s703_s16, 1  ;;  %vm207_vm0 = vcmask 130048   ;;  %v554_v1 = vld [vmem:[%s827_s1] sm:$0xff]   ;;  %v555_v2 = vld [vmem:[%s827_s1 + $0x8] sm:$0xff]   ;;  %v558_v5 = vld [vmem:[#allocation2 + $0x10] sm:$0xff]   ;;  %vm297_vm1 = vcmask 523264  }
  0x35   : > { %635 = vsyncadd (%p839_p0), [#allocation3], 4294966784  ;;  %483 = vmatprep.mubr.msk.bf16.mxu0 %vm207_vm0, %v554_v1  ;;  %v556_v3 = vld [vmem:[#allocation2] sm:$0xff]   ;;  %v557_v4 = vld [vmem:[#allocation2 + $0x8] sm:$0xff]   ;;  %s176_s4 = sand.u32 1, %s646_s13   ;;  %s471_s8 = sshll.u32 %s703_s16, 9 }
  0x36   : > { %s180_s19 = scalar_select %p179_p5, %s703_s16, 1  ;;  %487 = vmatprep.subr.bf16.mxu1 %v556_v3  ;;  %v559_v6 = vld [vmem:[#allocation2 + $0x18] sm:$0xff]  }
  0x37   : > { %488 = vmatpush3.bf16.msra.mxu1 %v556_v3  ;;  %s451_s5 = sshll.u32 %s176_s4, 5  ;;  %s783_s11 = scalar_lea.hbm %s829_s3, %s471_s8 }
  0x38   : > { %s470_s20 = sshll.u32 %s180_s19, 3  ;;  %489 = vmatprep.subr.bf16.mxu1 %v557_v4  ;;  %s178_s6 = scalar_lea.vmem [#allocation5], %s451_s5 }
  0x39   : > { %s183_s28 = scalar_lea.vmem %s826_s0, %s470_s20  ;;  %s371_s7 = sshll.u32 %s178_s6, 4  ;;  %s778_s7 = int_to_ptr.vmem [resolvable:$true] %s371_s7 }
  0x3a   : > { %v553_v0 = vld [vmem:[%s183_s28] sm:$0xff]   ;;  %s785_s17 = scalar_lea.sflag [#allocation4], %s176_s4  ;;  %s588_s16 = scalar_lea.vmem %s778_s7, 512 }
  0x3b   : > { %481 = vmatprep.subr.bf16.mxu0 %v553_v0  ;;  %490 = vmatpush3.bf16.msra.mxu1 %v557_v4  ;;  %p589_p6 = scmp.ne.s32.totalorder %s778_s7, %s588_s16  ;;  %p840_p9 = scmp.ne.s32.totalorder %s833_s22, 0 }
  0x3c   : > { %482 = vmatpush3.bf16.msra.mxu0 %v553_v0  ;;  %491 = vmatprep.subr.bf16.mxu1 %v558_v5  ;;  %s659_s19 = smov [#allocation5]  }
  0x3d   : > { %p590_p10 = pnand %p589_p6, %p840_p9  ;;  %s592_s20 = sshll.u32 %s659_s19, 4  ;;  %s593_s20 = int_to_ptr.vmem [resolvable:$false] %s592_s20 }
  0x3e   : > { %s594_s25 = scalar_lea.vmem %s593_s20, 1024  ;;  %p595_p2 = scmp.lt.s32.totalorder %s778_s7, %s593_s20 }
  0x3f   : > { %484 = vmatmul.mubr.msk.bf16.vlgmr.msra.gmra.mrb[0].mxu0 %vm207_vm0, %v555_v2  ;;  %492 = vmatpush3.bf16.msra.mxu1 %v558_v5  ;;  %p591_p12 = pneg %p590_p10  ;;  %p596_p3 = scmp.lt.s32.totalorder %s594_s25, %s588_s16 }
  0x40   : > { %493 = vmatprep.subr.bf16.mxu1 %v559_v6 }
  0x41   : > { %p597_p4 = por %p596_p3, %p595_p2 }
  0x43   : > { %494 = vmatpush3.bf16.msra.mxu1 %v559_v6  ;;  %p598_p7 = pnand %p597_p4, %p591_p12 }
 0x112   : > { %v485_v7 = vpop.f32.mrb[0].mxu0 }
 0x113   : > { %v248_v8 = vpop.f32.mrb[1].mxu0 }
 0x114   : > { %v486_v9 = vpop.f32.mrb[2].mxu0 }
 0x115   : > { %v264_v10 = vpack.c.bf16 %v486_v9, %v485_v7  ;;  %v251_v11 = vpop.f32.mrb[3].mxu0 }
 0x116   : > { %v263_v12 = vpack.c.bf16 %v251_v11, %v248_v8 }
 0x118   : > { %495 = vmatprep.mubr.msk.bf16.mxu1 %vm297_vm1, %v263_v12 }
 0x119   : > { %496 = vmatmul.mubr.msk.bf16.vlgmr.msra.gmra.mrb[0].mxu1 %vm297_vm1, %v264_v10 }
 0x1ec   : > { %v497_v13 = vpop.f32.mrb[0].mxu1 }
 0x1ed   : > { %355 = vst [vmem:[%s178_s6 + $0x10] sm:$0xff] %v497_v13  ;;  %v338_v14 = vpop.f32.mrb[1].mxu1 }
 0x1ee   : > { %353 = vst [vmem:[%s178_s6] sm:$0xff] %v338_v14  ;;  %v498_v15 = vpop.f32.mrb[2].mxu1 }
 0x1ef   : > { %356 = vst [vmem:[%s178_s6 + $0x18] sm:$0xff] %v498_v15  ;;  %v341_v16 = vpop.f32.mrb[3].mxu1 }
 0x1f0   : > { %354 = vst [vmem:[%s178_s6 + $0x8] sm:$0xff] %v341_v16 }
 0x1f1   : > { %601 = shalt.err (!%p598_p7)
}
 0x1f2   : > { %s602_s27 = scalar_lea.hbm %s783_s11, 512  ;;  %s606_s24 = scalar_lea.hbm %s829_s3, 1024 }
 0x1f3   : > { %p603_p8 = scmp.ne.s32.totalorder %s783_s11, %s602_s27  ;;  %p607_p1 = scmp.lt.u32.totalorder %s783_s11, %s829_s3 }
 0x1f4   : > { %p608_p0 = scmp.lt.u32.totalorder %s606_s24, %s602_s27  ;;  %p610_p6 = scmp.lt.u32.totalorder %s602_s27, %s783_s11 }
 0x1f5   : > { %p604_p11 = pnand %p603_p8, %p840_p9 }
 0x1f6   : > { %p609_p5 = por %p608_p0, %p607_p1 }
 0x1f7   : > { %p605_p13 = pneg %p604_p11 }
 0x1f8   : > { %p611_p10 = por %p610_p6, %p609_p5 }
 0x1fa   : > { %p612_p12 = pnand %p611_p10, %p605_p13 }
 0x1fc   : > { %615 = shalt.err (!%p612_p12)
}
 0x1fd   : > { %s660_s4 = smov 128   ;;  %s661_s5 = smov 8  }
 0x1fe   : > { %503 = dma.vmem_to_hbm [thread:$0]  (%p840_p9), %s778_s7, 512, %s783_s11, %s785_s17, %s660_s4, %s660_s4, %s661_s5  }
 0x1ff PF: > { %p515_p2 = scmp.ge.s32.totalorder %s654_s15, 2  ;;  %s386_s6 = sand.u32 1, %s642_s12  }
 0x200   : > { %p841_p3 = scmp.ne.s32.totalorder %s834_s23, 0  ;;  %s387_s8 = scalar_lea.sflag [#allocation4], %s386_s6 }
 0x202   : > { %p510_p4 = pnand %p515_p2, %p841_p3 }
 0x204   : > { %637 = dma.done.wait (!%p510_p4), %s387_s8, 512  }
 0x205   : > { %639 = vsyncadd (!%p510_p4), %s387_s8, 4294966784  ;;  %p14_p7 = scmp.ge.s32.totalorder %s707_s18, 4   ;;  %s842_s12 = smov %s646_s13 }
 0x206   : > { %s843_s13 = smov %s650_s14  ;;  %s844_s14 = smov %s718_s21 }
 0x207   : > { %s845_s15 = smov %s707_s18  ;;  %16 = sbr.rel (!%p14_p7) target bundleno = 4 (0x4), region = 72 }
 0x20e   :  { %392 = vsyncpa [#allocation3], 1 }
 0x20f   :  { %394 = vsyncpa [#allocation3 + $0x1], 1 }
 0x210   :  { %395 = vsyncpa [#allocation4], 1 }
 0x211   :  { %397 = vsyncpa [#allocation4 + $0x1], 1 }

</bundles_post_ra>
